<compile_context>
chip_gen: v5e
topology: v5e:2x2
jax: 0.10.0
libtpu: 0.0.40
codegen_flags: <defaults>
</compile_context>

<pallas_src>
import functools

import jax
import jax.numpy as jnp
from jax.experimental import pallas as pl
from jax.experimental.pallas import tpu as pltpu


def _round_up(n, m):
    return ((n + m - 1) // m) * m


def _cdiv(a, b):
    return -(-a // b)


def _vmem_capacity_bytes():
    """Physical VMEM of one TensorCore; conservative 64 MiB (v7x) fallback."""
    try:
        return int(pltpu.get_tpu_info().vmem_capacity_bytes)
    except Exception:  # best-effort hardware query; never fail the kernel
        return 64 * 1024 * 1024


def _footprint_bytes(bb, S, Hp, A, out_bytes):
    """Rough VMEM footprint of the fused kernel for one batch tile."""
    weights = (S * Hp + Hp * Hp + Hp * A) * 2              # bf16, single-buffered
    biases = (2 * Hp + max(A, 128)) * 4 * 8                # f32, sublane/lane padded
    io = 2 * bb * max(S, 128) * 4 + 2 * bb * max(A, 128) * out_bytes  # dbl-buffered x/out
    inter = 3 * bb * Hp * 4                                 # f32 + bf16 intermediates
    return weights + biases + io + inter


def _mlp_kernel(x_ref, w1_ref, b1_ref, w2_ref, b2_ref, w3_ref, b3_ref, o_ref):
    """Fused fc1->ReLU->fc2->ReLU->fc3 for one batch tile (all VMEM-resident).

    Weights are bf16 (MXU-native); accumulation is f32; biases are f32.
    """
    cdt = w1_ref.dtype  # MXU operand dtype (bf16)
    x = x_ref[...].astype(cdt)

    # fc1 + ReLU
    h1 = jnp.dot(x, w1_ref[...], preferred_element_type=jnp.float32)
    h1 = jnp.maximum(h1 + b1_ref[...], 0.0).astype(cdt)

    # fc2 + ReLU
    h2 = jnp.dot(h1, w2_ref[...], preferred_element_type=jnp.float32)
    h2 = jnp.maximum(h2 + b2_ref[...], 0.0).astype(cdt)

    # fc3 (no activation) -- stored directly into the unpadded (bb, A) block.
    out = jnp.dot(h2, w3_ref[...], preferred_element_type=jnp.float32)
    o_ref[...] = (out + b3_ref[...]).astype(o_ref.dtype)


@functools.partial(jax.jit, static_argnames=("block_b", "out_dtype"))
def mlp_forward(x, params, *, block_b=1024, out_dtype=None):
    """x: (B, state_dim) f32. params: dict from init_params (bf16 weights)."""
    B, S = x.shape
    Hp = params["w1"].shape[1]   # hidden dim, lane-padded
    A = params["w3"].shape[1]    # true action dim (unpadded output)
    out_dtype = x.dtype if out_dtype is None else out_dtype  # bf16 halves writeback if OK
    out_bytes = jnp.dtype(out_dtype).itemsize

    # --- batch tile ---------------------------------------------------------
    # Large tile for MXU M-utilization / per-step-overhead amortization, but
    # keep an even number of grid steps (>=2) when B >= 16 so both TensorCores
    # of a 2-TC chip (v7x) get work; harmless (~0.35us extra step) on 1-TC chips.
    if B >= 16:
        ntiles = 2 * _cdiv(B, 2 * block_b)
        bb = _round_up(_cdiv(B, ntiles), 8)
    else:
        bb = _round_up(max(B, 8), 8)
    bb = min(bb, _round_up(B, 8))

    # --- VMEM budget: cap at 75% of physical VMEM, shrink tile if needed ----
    budget = (3 * _vmem_capacity_bytes()) // 4
    while bb > 8 and _footprint_bytes(bb, S, Hp, A, out_bytes) > budget:
        bb = _round_up(max(bb // 2, 8), 8)
    vmem_limit = max(16 * 1024 * 1024,
                     min(budget,
                         _footprint_bytes(bb, S, Hp, A, out_bytes) + (8 << 20)))

    grid = (pl.cdiv(B, bb),)

    # Grid-invariant weights/biases: constant index_map keeps them resident
    # across the batch loop; Buffered(1) drops the useless second pipeline
    # buffer (halves weight VMEM).
    def full(shape):
        return pl.BlockSpec(shape, lambda i: (0, 0), pipeline_mode=pl.Buffered(1))

    out = pl.pallas_call(
        _mlp_kernel,
        out_shape=jax.ShapeDtypeStruct((B, A), out_dtype),
        grid_spec=pltpu.PrefetchScalarGridSpec(
            num_scalar_prefetch=0,
            grid=grid,
            in_specs=[
                pl.BlockSpec((bb, S), lambda i: (i, 0)),   # x batch tile
                full((S, Hp)),    # w1 (bf16)
                full((1, Hp)),    # b1 (f32)
                full((Hp, Hp)),   # w2
                full((1, Hp)),    # b2
                full((Hp, A)),    # w3 (true action dim)
                full((1, A)),     # b3
            ],
            out_specs=pl.BlockSpec((bb, A), lambda i: (i, 0)),
        ),
        compiler_params=pltpu.CompilerParams(
            dimension_semantics=("parallel",),   # shard batch across TCs
            vmem_limit_bytes=int(vmem_limit),
        ),
    )(x, params["w1"], params["b1"], params["w2"], params["b2"],
      params["w3"], params["b3"])
    return out


def init_params(key, state_dim, hidden_dim, action_dim,
                weight_dtype=jnp.bfloat16, lane_multiple=None):
    """PyTorch-Linear-style init (U(-1/sqrt(fan_in), +bound)).

    Weights stored as (in, out) in bf16.  The hidden dim is zero-padded to a
    lane multiple (256 for large H to match v6e/v7x's 256-wide MXU, else 128)
    so every MXU operand and intermediate is lane-dense.  The action dim is
    NOT padded: the kernel stores the true (B, action_dim) output directly.
    """
    if lane_multiple is None:
        lane_multiple = 256 if hidden_dim >= 256 else 128
    Hp = _round_up(hidden_dim, lane_multiple)
    ks = jax.random.split(key, 6)

    def linear(kw, kb, fan_in, fan_out, out_pad):
        bound = 1.0 / (fan_in ** 0.5)
        w = jax.random.uniform(kw, (fan_in, fan_out), jnp.float32, -bound, bound)
        b = jax.random.uniform(kb, (1, fan_out), jnp.float32, -bound, bound)
        if out_pad > fan_out:
            w = jnp.pad(w, ((0, 0), (0, out_pad - fan_out)))
            b = jnp.pad(b, ((0, 0), (0, out_pad - fan_out)))
        return w, b

    w1, b1 = linear(ks[0], ks[1], state_dim, hidden_dim, Hp)
    w2, b2 = linear(ks[2], ks[3], hidden_dim, hidden_dim, Hp)
    w3, b3 = linear(ks[4], ks[5], hidden_dim, action_dim, action_dim)
    # fc2/fc3 consume Hp-padded activations: zero-pad their contraction rows.
    w2 = jnp.pad(w2, ((0, Hp - hidden_dim), (0, 0)))
    w3 = jnp.pad(w3, ((0, Hp - hidden_dim), (0, 0)))

    return {"w1": w1.astype(weight_dtype), "b1": b1,
            "w2": w2.astype(weight_dtype), "b2": b2,
            "w3": w3.astype(weight_dtype), "b3": b3}


def mlp_reference(x, p):
    """Pure-JAX reference mirroring the kernel's bf16 quantization (f32 math)."""
    f32 = jnp.float32
    cdt = p["w1"].dtype
    h = x.astype(cdt).astype(f32)
    h = jnp.maximum(h @ p["w1"].astype(f32) + p["b1"], 0.0).astype(cdt).astype(f32)
    h = jnp.maximum(h @ p["w2"].astype(f32) + p["b2"], 0.0).astype(cdt).astype(f32)
    return h @ p["w3"].astype(f32) + p["b3"]


if __name__ == "__main__":
    key = jax.random.PRNGKey(0)
    k_param, k_x = jax.random.split(key)

    state_dim, hidden_dim, action_dim = 16, 32, 8
    batch = 2

    params = init_params(k_param, state_dim, hidden_dim, action_dim)
    x = jax.random.normal(k_x, (batch, state_dim), jnp.float32)

    out = mlp_forward(x, params)
    out = jax.block_until_ready(out)

    ref = mlp_reference(x, params)
    assert out.shape == (batch, action_dim)
    assert jnp.allclose(out, ref, atol=1e-2, rtol=1e-2), "mismatch vs reference"

    print("KERNEL_OK")
</pallas_src>

<mosaic_0001>
module attributes {stable_mosaic.version = 11 : i64} {
  func.func @_mlp_kernel(%arg0: i32, %arg1: memref<8x16xf32, #tpu.memory_space<vmem>>, %arg2: memref<16x128xbf16, #tpu.memory_space<vmem>>, %arg3: memref<1x128xf32, #tpu.memory_space<vmem>>, %arg4: memref<128x128xbf16, #tpu.memory_space<vmem>>, %arg5: memref<1x128xf32, #tpu.memory_space<vmem>>, %arg6: memref<128x8xbf16, #tpu.memory_space<vmem>>, %arg7: memref<1x8xf32, #tpu.memory_space<vmem>>, %arg8: memref<8x8xf32, #tpu.memory_space<vmem>>) attributes {dimension_semantics = [#tpu.dimension_semantics<parallel>], iteration_bounds = array<i64: 1>, scalar_prefetch = 0 : i64, scratch_operands = 0 : i64, tpu.core_type = #tpu.core_type<tc>, window_params = [{transform_indices = @transform_0, window_bounds = array<i64: 8, 16>}, {pipeline_mode = #tpu.pipeline_mode<synchronous>, transform_indices = @transform_1, window_bounds = array<i64: 16, 128>}, {pipeline_mode = #tpu.pipeline_mode<synchronous>, transform_indices = @transform_2, window_bounds = array<i64: 1, 128>}, {pipeline_mode = #tpu.pipeline_mode<synchronous>, transform_indices = @transform_3, window_bounds = array<i64: 128, 128>}, {pipeline_mode = #tpu.pipeline_mode<synchronous>, transform_indices = @transform_4, window_bounds = array<i64: 1, 128>}, {pipeline_mode = #tpu.pipeline_mode<synchronous>, transform_indices = @transform_5, window_bounds = array<i64: 128, 8>}, {pipeline_mode = #tpu.pipeline_mode<synchronous>, transform_indices = @transform_6, window_bounds = array<i64: 1, 8>}, {transform_indices = @transform_7, window_bounds = array<i64: 8, 8>}]} {
    %c0 = arith.constant 0 : index
    %c0_0 = arith.constant 0 : index
    %0 = vector.load %arg1[%c0, %c0_0] : memref<8x16xf32, #tpu.memory_space<vmem>>, vector<8x16xf32>
    %1 = arith.truncf %0 : vector<8x16xf32> to vector<8x16xbf16>
    %c0_1 = arith.constant 0 : index
    %c0_2 = arith.constant 0 : index
    %2 = vector.load %arg2[%c0_1, %c0_2] : memref<16x128xbf16, #tpu.memory_space<vmem>>, vector<16x128xbf16>
    %cst = arith.constant dense<0.000000e+00> : vector<8x128xf32>
    %3 = tpu.matmul %1, %2, %cst {dimension_numbers = #tpu.dot_dimension_numbers<[1], [0], [0], [1], [0, 0, 1, 1], [], []>} : vector<8x16xbf16>, vector<16x128xbf16>, vector<8x128xf32> -> vector<8x128xf32>
    %c0_3 = arith.constant 0 : index
    %c0_4 = arith.constant 0 : index
    %4 = vector.load %arg3[%c0_3, %c0_4] : memref<1x128xf32, #tpu.memory_space<vmem>>, vector<1x128xf32>
    %5 = vector.broadcast %4 : vector<1x128xf32> to vector<8x128xf32>
    %6 = arith.addf %3, %5 : vector<8x128xf32>
    %cst_5 = arith.constant 0.000000e+00 : f32
    %7 = vector.broadcast %cst_5 : f32 to vector<8x128xf32>
    %8 = arith.maximumf %6, %7 : vector<8x128xf32>
    %9 = arith.truncf %8 : vector<8x128xf32> to vector<8x128xbf16>
    %c0_6 = arith.constant 0 : index
    %c0_7 = arith.constant 0 : index
    %10 = vector.load %arg4[%c0_6, %c0_7] : memref<128x128xbf16, #tpu.memory_space<vmem>>, vector<128x128xbf16>
    %cst_8 = arith.constant dense<0.000000e+00> : vector<8x128xf32>
    %11 = tpu.matmul %9, %10, %cst_8 {dimension_numbers = #tpu.dot_dimension_numbers<[1], [0], [0], [1], [0, 0, 1, 1], [], []>} : vector<8x128xbf16>, vector<128x128xbf16>, vector<8x128xf32> -> vector<8x128xf32>
    %c0_9 = arith.constant 0 : index
    %c0_10 = arith.constant 0 : index
    %12 = vector.load %arg5[%c0_9, %c0_10] : memref<1x128xf32, #tpu.memory_space<vmem>>, vector<1x128xf32>
    %13 = vector.broadcast %12 : vector<1x128xf32> to vector<8x128xf32>
    %14 = arith.addf %11, %13 : vector<8x128xf32>
    %cst_11 = arith.constant 0.000000e+00 : f32
    %15 = vector.broadcast %cst_11 : f32 to vector<8x128xf32>
    %16 = arith.maximumf %14, %15 : vector<8x128xf32>
    %17 = arith.truncf %16 : vector<8x128xf32> to vector<8x128xbf16>
    %c0_12 = arith.constant 0 : index
    %c0_13 = arith.constant 0 : index
    %18 = vector.load %arg6[%c0_12, %c0_13] : memref<128x8xbf16, #tpu.memory_space<vmem>>, vector<128x8xbf16>
    %cst_14 = arith.constant dense<0.000000e+00> : vector<8x8xf32>
    %19 = tpu.matmul %17, %18, %cst_14 {dimension_numbers = #tpu.dot_dimension_numbers<[1], [0], [0], [1], [0, 0, 1, 1], [], []>} : vector<8x128xbf16>, vector<128x8xbf16>, vector<8x8xf32> -> vector<8x8xf32>
    %c0_15 = arith.constant 0 : index
    %c0_16 = arith.constant 0 : index
    %20 = vector.load %arg7[%c0_15, %c0_16] : memref<1x8xf32, #tpu.memory_space<vmem>>, vector<1x8xf32>
    %21 = vector.broadcast %20 : vector<1x8xf32> to vector<8x8xf32>
    %22 = arith.addf %19, %21 : vector<8x8xf32>
    %c0_17 = arith.constant 0 : index
    %c0_18 = arith.constant 0 : index
    %23 = vector.load %arg8[%c0_17, %c0_18] : memref<8x8xf32, #tpu.memory_space<vmem>>, vector<8x8xf32>
    tpu.vector_store %arg8[%c0_17, %c0_18], %22 {strides = array<i32>} : memref<8x8xf32, #tpu.memory_space<vmem>>, vector<8x8xf32>,
    return
  }
  func.func @transform_0(%arg0: i32) -> (i32, i32) {
    %c0_i32 = arith.constant 0 : i32
    %c0_i32_0 = arith.constant 0 : i32
    return %arg0, %c0_i32 : i32, i32
  }
  func.func @transform_1(%arg0: i32) -> (i32, i32) {
    %c0_i32 = arith.constant 0 : i32
    %c0_i32_0 = arith.constant 0 : i32
    %c0_i32_1 = arith.constant 0 : i32
    return %c0_i32, %c0_i32_0 : i32, i32
  }
  func.func @transform_2(%arg0: i32) -> (i32, i32) {
    %c0_i32 = arith.constant 0 : i32
    %c0_i32_0 = arith.constant 0 : i32
    %c0_i32_1 = arith.constant 0 : i32
    return %c0_i32, %c0_i32_0 : i32, i32
  }
  func.func @transform_3(%arg0: i32) -> (i32, i32) {
    %c0_i32 = arith.constant 0 : i32
    %c0_i32_0 = arith.constant 0 : i32
    %c0_i32_1 = arith.constant 0 : i32
    return %c0_i32, %c0_i32_0 : i32, i32
  }
  func.func @transform_4(%arg0: i32) -> (i32, i32) {
    %c0_i32 = arith.constant 0 : i32
    %c0_i32_0 = arith.constant 0 : i32
    %c0_i32_1 = arith.constant 0 : i32
    return %c0_i32, %c0_i32_0 : i32, i32
  }
  func.func @transform_5(%arg0: i32) -> (i32, i32) {
    %c0_i32 = arith.constant 0 : i32
    %c0_i32_0 = arith.constant 0 : i32
    %c0_i32_1 = arith.constant 0 : i32
    return %c0_i32, %c0_i32_0 : i32, i32
  }
  func.func @transform_6(%arg0: i32) -> (i32, i32) {
    %c0_i32 = arith.constant 0 : i32
    %c0_i32_0 = arith.constant 0 : i32
    %c0_i32_1 = arith.constant 0 : i32
    return %c0_i32, %c0_i32_0 : i32, i32
  }
  func.func @transform_7(%arg0: i32) -> (i32, i32) {
    %c0_i32 = arith.constant 0 : i32
    %c0_i32_0 = arith.constant 0 : i32
    return %arg0, %c0_i32 : i32, i32
  }
}

</mosaic_0001>

<bundles_post_ra>
// kernel: mlp_forward.1
= control target key start
LH: loop header
LB: loop body
LE: loop exit
PB: predicated region body
PF: predicated region fallthrough
CT: control target
= control target key end

     0   :  { %12 = vsyncpa [#allocation3], 0  ;;  %s521_s0 = inlined_call_operand.vmem [shape: f32[2,16], index: 0, kind: input, shape index: {}]   ;;  %s522_s1 = inlined_call_operand.hbm [shape: bf16[16,128], index: 1, kind: input, shape index: {}]   ;;  %s523_s2 = inlined_call_operand.vmem [shape: f32[1,128], index: 2, kind: input, shape index: {}]   ;;  %s524_s3 = inlined_call_operand.vmem [shape: bf16[128,128], index: 3, kind: input, shape index: {}]   ;;  %s525_s4 = inlined_call_operand.vmem [shape: f32[1,128], index: 4, kind: input, shape index: {}]   ;;  %s526_s5 = inlined_call_operand.vmem [shape: bf16[128,8], index: 5, kind: input, shape index: {}]   ;;  %s527_s6 = inlined_call_operand.vmem [shape: f32[1,8], index: 6, kind: input, shape index: {}]   ;;  %s528_s7 = inlined_call_operand.hbm [shape: f32[2,8], index: 7, kind: output, shape index: {}]  }
   0x1   :  { %13 = vsyncpa [#allocation4], 0  ;;  %s20_s26 = sshll.u32 %s522_s1, 4  ;;  %s409_s27 = smov [#allocation2]   ;;  %s21_s26 = int_to_ptr.hbm [resolvable:$true] %s20_s26 }
   0x2   :  { %s22_s28 = sshll.u32 %s409_s27, 4  ;;  %s410_s29 = smov 64   ;;  %s23_s28 = int_to_ptr.vmem [resolvable:$true] %s22_s28 }
   0x3   :  { %s411_s30 = smov 4  }
   0x4   :  { %28 = dma.hbm_to_vmem [thread:$0]  %s21_s26, 128, %s23_s28, [#allocation3], %s410_s29, %s410_s29, %s411_s30  }
   0x5   :  { %405 = dma.done.wait [#allocation3], 128  }
   0x6   :  { %406 = vsyncadd [#allocation3], 4294967168  ;;  %v331_v0 = vld [vmem:[#allocation2] sm:$0xff]  ;;  %v339_v2 = vld [vmem:[%s524_s3 + $0x38] sm:$0xff]  ;;  %vm58_vm0 = vcmask 130048   ;;  %vm241_vm1 = vcmask 64512  }
   0x7   :  { %v44_v1 = vld [vmem:[%s521_s0] sm:$0xff]  ;;  %69 = vmatpush.bf16.msra.mxu0 %v331_v0  ;;  %145 = vmatpush.bf16.msra.mxu1 %v339_v2  ;;  %v338_v4 = vld [vmem:[%s524_s3 + $0x30] sm:$0xff]  ;;  %v337_v5 = vld [vmem:[%s524_s3 + $0x28] sm:$0xff] }
   0x8   :  { %v45_v3 = vpack.c.bf16 %v44_v1, %v44_v1  ;;  %v336_v6 = vld [vmem:[%s524_s3 + $0x20] sm:$0xff]  ;;  %v335_v7 = vld [vmem:[%s524_s3 + $0x18] sm:$0xff]  ;;  %v334_v8 = vld [vmem:[%s524_s3 + $0x10] sm:$0xff] }
   0x9   :  { %v333_v9 = vld [vmem:[%s524_s3 + $0x8] sm:$0xff]  ;;  %v332_v10 = vld [vmem:[%s524_s3] sm:$0xff]  ;;  %v347_v11 = vld [vmem:[%s526_s5 + $0x38] sm:$0xff] }
   0xa   :  { %266 = vmatmul.msk.bf16.vlgmr.msra.gmra.mxu0 %vm58_vm0, %v45_v3  ;;  %228 = vmatpush.bf16.msra.mxu2 %v347_v11  ;;  %v346_v12 = vld [vmem:[%s526_s5 + $0x30] sm:$0xff]  ;;  %v345_v13 = vld [vmem:[%s526_s5 + $0x28] sm:$0xff]  ;;  %v344_v14 = vld [vmem:[%s526_s5 + $0x20] sm:$0xff] }
   0xb   :  { %146 = vmatpush.bf16.msra.mxu1 %v338_v4  ;;  %v343_v15 = vld [vmem:[%s526_s5 + $0x18] sm:$0xff]  ;;  %v342_v16 = vld [vmem:[%s526_s5 + $0x10] sm:$0xff]  ;;  %v354_v17 = vld [vmem:[%s523_s2] ss:$0 sm:$0xff] }
   0xc   :  { %v341_v23 = vld [vmem:[%s526_s5 + $0x8] sm:$0xff]  ;;  %v340_v24 = vld [vmem:[%s526_s5] sm:$0xff] }
   0xd   :  { %v355_v25 = vld [vmem:[%s525_s4] ss:$0 sm:$0xff] }
   0xe   :  { %229 = vmatpush.bf16.msra.mxu2 %v346_v12  ;;  %v356_v31 = vld [vmem:[%s527_s6] ss:$0 sm:$0xff] }
   0xf   :  { %147 = vmatpush.bf16.msra.mxu1 %v337_v5 }
  0x12   :  { %230 = vmatpush.bf16.msra.mxu2 %v345_v13 }
  0x13   :  { %148 = vmatpush.bf16.msra.mxu1 %v336_v6 }
  0x16   :  { %231 = vmatpush.bf16.msra.mxu2 %v344_v14 }
  0x17   :  { %149 = vmatpush.bf16.msra.mxu1 %v335_v7 }
  0x1a   :  { %232 = vmatpush.bf16.msra.mxu2 %v343_v15 }
  0x1b   :  { %150 = vmatpush.bf16.msra.mxu1 %v334_v8 }
  0x1e   :  { %233 = vmatpush.bf16.msra.mxu2 %v342_v16 }
  0x1f   :  { %151 = vmatpush.bf16.msra.mxu1 %v333_v9 }
  0x22   :  { %234 = vmatpush.bf16.msra.mxu2 %v341_v23 }
  0x23   :  { %152 = vmatpush.bf16.msra.mxu1 %v332_v10 }
  0x26   :  { %235 = vmatpush.bf16.msra.mxu2 %v340_v24 }
  0x87   :  { %v71_v18 = vpop.f32.mrf.mxu0 }
  0x88   :  { %v72_v19 = vadd.f32 %v354_v17, %v71_v18 }
  0x8a   :  { %v75_v20 = vmax.f32 %v72_v19, 0.0 }
  0x8c   :  { %v76_v21 = vpack.c.bf16 %v75_v20, %v75_v20 }
  0x8e   :  { %153 = vmatmul.bf16.vlgmr.msra.gmra.mxu1 %v76_v21 }
  0x8f   :  { %v73_v22 = vpop.f32.mrf.mxu0 }
 0x10b   :  { %v154_v26 = vpop.f32.mrf.mxu1 }
 0x10c   :  { %v155_v27 = vadd.f32 %v355_v25, %v154_v26 }
 0x10e   :  { %v158_v28 = vmax.f32 %v155_v27, 0.0 }
 0x110   :  { %v159_v29 = vpack.c.bf16 %v158_v28, %v158_v28 }
 0x112   :  { %236 = vmatmul.bf16.vlgmr.msra.gmra.mxu2 %v159_v29 }
 0x113   :  { %v156_v30 = vpop.f32.mrf.mxu1 }
 0x195   :  { %v237_v32 = vpop.f32.mrf.mxu2 }
 0x196   :  { %v238_v33 = vadd.f32 %v356_v31, %v237_v32 }
 0x198   :  { %242 = vst.msk [vmem:[#allocation5] sm:$0xff] %vm241_vm1, %v238_v33 }
 0x19d   :  { %v239_v34 = vpop.f32.mrf.mxu2 }
 0x19e   :  { %246 = vsyncadd [#allocation4], 96  ;;  %s249_s4 = sshll.u32 %s528_s7, 4  ;;  %s412_s20 = smov [#allocation5]   ;;  %s250_s4 = int_to_ptr.hbm [resolvable:$true] %s249_s4 }
 0x19f   :  { %s247_s21 = sshll.u32 %s412_s20, 4  ;;  %s413_s22 = smov 32   ;;  %s248_s21 = int_to_ptr.vmem [resolvable:$true] %s247_s21 }
 0x1a0   :  { %s414_s23 = smov 2  }
 0x1a1   :  { %255 = dma.vmem_to_hbm [thread:$0]  %s248_s21, 32, %s250_s4, [#allocation4], %s413_s22, %s413_s22, %s414_s23  }
 0x1a2   :  { %407 = dma.done.wait [#allocation4], 128  }
 0x1a3   :  { %408 = vsyncadd [#allocation4], 4294967168 }
 0x1a4   :  { %260 = vsyncpa [#allocation3], 1 }
 0x1a5   :  { %261 = vsyncpa [#allocation4], 1 }

</bundles_post_ra>
